<compile_context>
chip_gen: v7x
topology: tpu7x:2x2x1
jax: 0.10.0
libtpu: 0.0.40
codegen_flags: <defaults>
</compile_context>

<pallas_src>
import jax
import jax.numpy as jnp
from jax.experimental import pallas as pl
from jax.experimental.pallas import tpu as pltpu


# ------------------------------ fused kernel ------------------------------ #

def _cam_kernel(x_ref, g_ref, o_ref):
    x = x_ref[...]                                   # (Bt, C, M) f32
    xb = x.astype(jnp.bfloat16)                      # MXU operands

    # energy[b,c,d] = sum_m x[b,c,m] * x[b,d,m]  (q @ q^T), bf16 in / f32 acc.
    energy = jnp.einsum('bcm,bdm->bcd', xb, xb,
                        preferred_element_type=jnp.float32)     # (Bt, C, C)

    # Inverted, stabilized softmax with a single reduction:
    #   softmax(rowmax(E) - E) == exp(rowmin(E) - E) / sum(...)
    m = jnp.min(energy, axis=-1, keepdims=True)                 # (Bt, C, 1)
    p = jnp.exp(m - energy)                                     # (Bt, C, C) f32
    denom = jnp.sum(p, axis=-1, keepdims=True)                  # >= 1 always

    # Deferred normalization: out = (gamma / denom) * (p @ q) + x
    out_un = jnp.einsum('bcd,bdm->bcm', p.astype(jnp.bfloat16), xb,
                        preferred_element_type=jnp.float32)     # (Bt, C, M)
    scale = g_ref[0, 0] * pl.reciprocal(denom, approx=True)     # EUP slot
    o_ref[...] = scale * out_un + x                             # lane-dense store


# --------------------------------- helpers --------------------------------- #

def _vmem_limit_bytes():
    """Generation-aware scoped-VMEM limit (leave compiler headroom)."""
    try:
        cap = pltpu.get_tpu_info().vmem_capacity_bytes
    except Exception:
        cap = 64 * 1024 * 1024          # conservative (v7x physical)
    return min(int(cap * 3 // 4), 112 * 1024 * 1024)


def _pick_batch_tile(B, C, M, vmem_limit):
    """Largest Bt dividing B whose per-step footprint fits, keeping >= 2 grid
    steps (when B >= 2) so both v7x TensorCores get work."""
    budget = vmem_limit // 2
    best = 1
    for bt in range(1, B + 1):
        if B % bt != 0:
            continue
        per_step = bt * C * M * 4 * 4        # in/out blocks, double-buffered, f32
        per_step += bt * C * M * 2 * 2       # bf16 copy of x + f32->store temp slack
        per_step += bt * C * C * 4 * 2       # energy + p
        if per_step > budget:
            continue
        if B >= 2 and (B // bt) < 2:
            continue
        best = bt
    return best


# --------------------------------- wrapper --------------------------------- #

def cam_forward(x, gamma):
    """Channel-attention forward.  x: [B, C, H, W] float32, gamma: scalar."""
    B, C, H, W = x.shape
    M = H * W

    q = x.reshape(B, C, M).astype(jnp.float32)       # no padding, no extra HBM pass
    g = jnp.asarray(gamma, jnp.float32).reshape(1, 1)

    vmem_limit = _vmem_limit_bytes()
    Bt = _pick_batch_tile(B, C, M, vmem_limit)

    cost = pl.CostEstimate(
        flops=4 * B * C * C * M,          # two C x C x M matmuls per batch
        transcendentals=B * C * C,        # exp
        bytes_accessed=2 * B * C * M * 4, # read x + write out
    )

    out = pl.pallas_call(
        _cam_kernel,
        out_shape=jax.ShapeDtypeStruct((B, C, M), jnp.float32),
        grid_spec=pltpu.PrefetchScalarGridSpec(
            num_scalar_prefetch=0,
            grid=(B // Bt,),
            in_specs=[
                pl.BlockSpec((Bt, C, M), lambda b: (b, 0, 0)),
                pl.BlockSpec(memory_space=pltpu.MemorySpace.SMEM),
            ],
            out_specs=pl.BlockSpec((Bt, C, M), lambda b: (b, 0, 0)),
        ),
        compiler_params=pltpu.CompilerParams(
            dimension_semantics=("parallel",),   # shard batch blocks over TCs
            vmem_limit_bytes=vmem_limit,
        ),
        cost_estimate=cost,
    )(q, g)

    return out.reshape(B, C, H, W)


# ------------------------- pure-JAX reference check ------------------------ #

def cam_reference(x, gamma):
    B, C, H, W = x.shape
    q = x.reshape(B, C, H * W)
    energy = jnp.einsum('bcm,bdm->bcd', q, q,
                        precision=jax.lax.Precision.HIGHEST)
    energy_new = jnp.max(energy, axis=-1, keepdims=True) - energy
    attn = jax.nn.softmax(energy_new, axis=-1)
    out = jnp.einsum('bcd,bdm->bcm', attn, q,
                     precision=jax.lax.Precision.HIGHEST)
    return (gamma * out + q).reshape(B, C, H, W)


# ---------------------------------- driver --------------------------------- #

if __name__ == "__main__":
    key = jax.random.PRNGKey(0)
    B, C, H, W = 2, 64, 16, 16                  # B X C X H X W feature maps
    # Modest-scale inputs keep the channel-energy logits O(1), so the check is
    # insensitive to bf16-operand / accumulation-order differences.
    x = 0.1 * jax.random.normal(key, (B, C, H, W), jnp.float32)

    # nn.Parameter(torch.zeros(1)) initialises gamma to 0 (which makes
    # out == x); use a nonzero gamma so the attention path is exercised.
    gamma = jnp.float32(0.5)

    fwd = jax.jit(cam_forward)
    out = fwd(x, gamma)
    jax.block_until_ready(out)

    ref = cam_reference(x, gamma)
    assert out.shape == (B, C, H, W), out.shape
    assert out.dtype == jnp.float32
    max_err = float(jnp.max(jnp.abs(out - ref)))
    assert max_err < 1e-2, f"max abs err {max_err}"
    print("KERNEL_OK")
</pallas_src>

<mosaic_0001>
module attributes {stable_mosaic.version = 11 : i64} {
  func.func @_cam_kernel(%arg0: i32, %arg1: memref<1x64x256xf32, #tpu.memory_space<vmem>>, %arg2: memref<1x1xf32, #tpu.memory_space<smem>>, %arg3: memref<1x64x256xf32, #tpu.memory_space<vmem>>) attributes {dimension_semantics = [#tpu.dimension_semantics<parallel>], iteration_bounds = array<i64: 2>, scalar_prefetch = 0 : i64, scratch_operands = 0 : i64, tpu.core_type = #tpu.core_type<tc>, window_params = [{transform_indices = @transform_0, window_bounds = array<i64: 1, 64, 256>}, {transform_indices = @transform_1, window_bounds = array<i64: 1, 1>}, {transform_indices = @transform_2, window_bounds = array<i64: 1, 64, 256>}]} {
    %c0 = arith.constant 0 : index
    %c0_0 = arith.constant 0 : index
    %c0_1 = arith.constant 0 : index
    %0 = vector.load %arg1[%c0, %c0_0, %c0_1] : memref<1x64x256xf32, #tpu.memory_space<vmem>>, vector<1x64x256xf32>
    %1 = arith.truncf %0 : vector<1x64x256xf32> to vector<1x64x256xbf16>
    "tpu.trace_start"() <{level = 10 : i32, message = "bcm,bdm->bcd"}> : () -> ()
    %cst = arith.constant dense<0.000000e+00> : vector<1x64x64xf32>
    %2 = tpu.matmul %1, %1, %cst {dimension_numbers = #tpu.dot_dimension_numbers<[2], [2], [1], [1], [0, 0, 0, 1, 1, 1], [0], [0]>} : vector<1x64x256xbf16>, vector<1x64x256xbf16>, vector<1x64x64xf32> -> vector<1x64x64xf32>
    "tpu.trace_stop"() : () -> ()
    %cst_2 = arith.constant dense<0x7F800000> : vector<1x64xf32>
    %3 = vector.multi_reduction <minimumf>, %2, %cst_2 [2] : vector<1x64x64xf32> to vector<1x64xf32>
    %4 = vector.shape_cast %3 : vector<1x64xf32> to vector<1x64x1xf32>
    %5 = vector.broadcast %4 : vector<1x64x1xf32> to vector<1x64x64xf32>
    %6 = arith.subf %5, %2 : vector<1x64x64xf32>
    %7 = math.exp %6 : vector<1x64x64xf32>
    %cst_3 = arith.constant dense<0.000000e+00> : vector<1x64xf32>
    %8 = vector.multi_reduction <add>, %7, %cst_3 [2] : vector<1x64x64xf32> to vector<1x64xf32>
    %9 = vector.shape_cast %8 : vector<1x64xf32> to vector<1x64x1xf32>
    %10 = arith.truncf %7 : vector<1x64x64xf32> to vector<1x64x64xbf16>
    "tpu.trace_start"() <{level = 10 : i32, message = "bcd,bdm->bcm"}> : () -> ()
    %cst_4 = arith.constant dense<0.000000e+00> : vector<1x64x256xf32>
    %11 = tpu.matmul %10, %1, %cst_4 {dimension_numbers = #tpu.dot_dimension_numbers<[2], [1], [1], [2], [0, 0, 0, 1, 1, 2], [0], [0]>} : vector<1x64x64xbf16>, vector<1x64x256xbf16>, vector<1x64x256xf32> -> vector<1x64x256xf32>
    "tpu.trace_stop"() : () -> ()
    %c0_5 = arith.constant 0 : index
    %c0_6 = arith.constant 0 : index
    %12 = memref.load %arg2[%c0_5, %c0_6] : memref<1x1xf32, #tpu.memory_space<smem>>
    %13 = tpu.reciprocal %9 {approx = true} : vector<1x64x1xf32> -> vector<1x64x1xf32>
    %14 = vector.broadcast %12 : f32 to vector<1x64x1xf32>
    %15 = arith.mulf %14, %13 : vector<1x64x1xf32>
    %16 = vector.broadcast %15 : vector<1x64x1xf32> to vector<1x64x256xf32>
    %17 = arith.mulf %16, %11 : vector<1x64x256xf32>
    %18 = arith.addf %17, %0 : vector<1x64x256xf32>
    %c0_7 = arith.constant 0 : index
    %c0_8 = arith.constant 0 : index
    %c0_9 = arith.constant 0 : index
    %19 = vector.load %arg3[%c0_7, %c0_8, %c0_9] : memref<1x64x256xf32, #tpu.memory_space<vmem>>, vector<1x64x256xf32>
    tpu.vector_store %arg3[%c0_7, %c0_8, %c0_9], %18 {strides = array<i32>} : memref<1x64x256xf32, #tpu.memory_space<vmem>>, vector<1x64x256xf32>,
    return
  }
  func.func @transform_0(%arg0: i32) -> (i32, i32, i32) {
    %c0_i32 = arith.constant 0 : i32
    %c0_i32_0 = arith.constant 0 : i32
    %c0_i32_1 = arith.constant 0 : i32
    return %arg0, %c0_i32, %c0_i32_0 : i32, i32, i32
  }
  func.func @transform_1(%arg0: i32) -> (i32, i32) {
    %c0_i32 = arith.constant 0 : i32
    %c0_i32_0 = arith.constant 0 : i32
    %c0_i32_1 = arith.constant 0 : i32
    return %c0_i32, %c0_i32_0 : i32, i32
  }
  func.func @transform_2(%arg0: i32) -> (i32, i32, i32) {
    %c0_i32 = arith.constant 0 : i32
    %c0_i32_0 = arith.constant 0 : i32
    %c0_i32_1 = arith.constant 0 : i32
    return %arg0, %c0_i32, %c0_i32_0 : i32, i32, i32
  }
}

</mosaic_0001>

<bundles_post_ra>
// kernel: cam_forward.1
= control target key start
LH: loop header
LB: loop body
LE: loop exit
PB: predicated region body
PF: predicated region fallthrough
CT: control target
= control target key end

     0   :  { %s603_s11 = smov 0   ;;  %s757_s0 = inlined_call_operand.vmem [shape: f32[2,64,256], index: 0, kind: input, shape index: {}]   ;;  %s758_s1 = inlined_call_operand.<no memory space> [shape: f32[1,1], index: 1, kind: input, shape index: {}]   ;;  %s759_s2 = inlined_call_operand.vmem [shape: f32[2,64,256], index: 2, kind: output, shape index: {}]  }
   0x1   :  { %7 = sst [smem:[#allocation2]] %s758_s1 }
   0x2 LB: > { %s518_s12 = sadd.s32 4294967295, %s582_s11   ;;  %p522_p0 = scmp.ge.s32.totalorder %s582_s11, 1  ;;  %s582_s11 = sphi %s603_s11, %s13_s11  }
   0x3   : > { %p113_p1 = scmp.lt.s32.totalorder %s582_s11, 3 }
   0x5   : > { %p114_p2 = pnand %p522_p0, %p113_p1 }
   0x6   : > { %p135_p3 = scmp.lt.s32.totalorder (!%p114_p2), %s518_s12, 1  ;;  %vm235_vm0 = vcmask (!%p114_p2), 523264   ;;  %v584_v48 = vmov (!%p114_p2), 0   ;;  %s397_s16 = sld [smem:[#allocation2]] (!%p114_p2) }
   0x7   : > { %117 = sbr.rel (%p114_p2) target bundleno = 672 (0x2a0), region = 28  ;;  %356 = vmatprep.mubr.bf16.mxu1 (!%p114_p2), %v584_v48 }
   0xe   : > { %s761_s12 = smov (!%p135_p3, %s518_s12), 1 }
   0xf   : > { %s533_s1 = sshll.u32 %s761_s12, 7 }
  0x10   : > { %s619_s15 = scalar_lea.vmem %s757_s0, %s533_s1  ;;  %s714_s19 = scalar_lea.vmem %s759_s2, %s533_s1 }
  0x11   : > { %v622_v0 = vld [vmem:[%s619_s15 + $0x8] sm:$0xff]  ;;  %v625_v1 = vld [vmem:[%s619_s15 + $0x18] sm:$0xff]  ;;  %v628_v2 = vld [vmem:[%s619_s15] sm:$0xff] }
  0x12   : > { %v163_v3 = vpack.c.bf16 %v625_v1, %v622_v0  ;;  %v633_v4 = vld [vmem:[%s619_s15 + $0x10] sm:$0xff]  ;;  %v636_v5 = vld [vmem:[%s619_s15 + $0x28] sm:$0xff]  ;;  %v639_v6 = vld [vmem:[%s619_s15 + $0x38] sm:$0xff] }
  0x13   : > { %v162_v7 = vpack.c.bf16 %v633_v4, %v628_v2  ;;  %v165_v8 = vpack.c.bf16 %v639_v6, %v636_v5  ;;  %v646_v9 = vld [vmem:[%s619_s15 + $0x20] sm:$0xff]  ;;  %v649_v10 = vld [vmem:[%s619_s15 + $0x30] sm:$0xff]  ;;  %v652_v11 = vld [vmem:[%s619_s15 + $0x48] sm:$0xff] }
  0x14   : > { %170 = vmatprep.subr.bf16.mxu0 %v163_v3  ;;  %202 = vmatprep.mubr.bf16.mxu0 %v163_v3  ;;  %v655_v12 = vld [vmem:[%s619_s15 + $0x58] sm:$0xff]  ;;  %v164_v13 = vpack.c.bf16 %v649_v10, %v646_v9  ;;  %v662_v15 = vld [vmem:[%s619_s15 + $0x40] sm:$0xff]  ;;  %v665_v16 = vld [vmem:[%s619_s15 + $0x50] sm:$0xff] }
  0x15   : > { %171 = vmatpush1.bf16.xpose.msra.mxu0 %v162_v7  ;;  %324 = vmatprep.subr.bf16.mxu1 %v163_v3  ;;  %v167_v14 = vpack.c.bf16 %v655_v12, %v652_v11  ;;  %v668_v17 = vld [vmem:[%s619_s15 + $0x68] sm:$0xff]  ;;  %v671_v18 = vld [vmem:[%s619_s15 + $0x78] sm:$0xff]  ;;  %v166_v19 = vpack.c.bf16 %v665_v16, %v662_v15  ;;  %v678_v21 = vld [vmem:[%s619_s15 + $0x60] sm:$0xff] }
  0x16   : > { %172 = vmatprep.subr.bf16.mxu0 %v165_v8  ;;  %325 = vmatpush1.bf16.msra.mxu1 %v162_v7  ;;  %v169_v20 = vpack.c.bf16 %v671_v18, %v668_v17  ;;  %v681_v22 = vld [vmem:[%s619_s15 + $0x70] sm:$0xff] }
  0x17   : > { %326 = vmatprep.subr.bf16.mxu1 %v165_v8  ;;  %v168_v23 = vpack.c.bf16 %v681_v22, %v678_v21 }
  0x1a   : > { %327 = vmatpush1.bf16.msra.mxu1 %v164_v13 }
  0x1b   : > { %328 = vmatprep.subr.bf16.mxu1 %v167_v14 }
  0x1d   : > { %173 = vmatpush1.bf16.xpose.msra.mxu0 %v164_v13 }
  0x1e   : > { %174 = vmatprep.subr.bf16.mxu0 %v167_v14  ;;  %329 = vmatpush1.bf16.msra.mxu1 %v166_v19 }
  0x1f   : > { %330 = vmatprep.subr.bf16.mxu1 %v169_v20 }
  0x22   : > { %331 = vmatpush1.bf16.msra.mxu1 %v168_v23 }
  0x25   : > { %175 = vmatpush1.bf16.xpose.msra.mxu0 %v166_v19 }
  0x26   : > { %176 = vmatprep.subr.bf16.mxu0 %v169_v20 }
  0x2d   : > { %177 = vmatpush1.bf16.xpose.msra.mxu0 %v168_v23 }
  0x34   : > { %203 = vmatmul.mubr.bf16.vlgmr.msra.gmra.mrb[0].mxu0 %v162_v7 }
  0x35   : > { %210 = vmatprep.mubr.bf16.mxu0 %v165_v8 }
  0x3c   : > { %211 = vmatmul.mubr.bf16.gmra.mrb[4].mxu0 %v164_v13 }
  0x3d   : > { %218 = vmatprep.mubr.bf16.mxu0 %v167_v14 }
  0x44   : > { %219 = vmatmul.mubr.bf16.gmra.mrb[8].mxu0 %v166_v19 }
  0x45   : > { %226 = vmatprep.mubr.bf16.mxu0 %v169_v20 }
  0x4c   : > { %227 = vmatmul.mubr.bf16.gmra.mrb[12].mxu0 %v168_v23 }
 0x107   : > { %v204_v24 = vpop.f32.mrb[0].mxu0 }
 0x108   : > { %v206_v25 = vpop.f32.mrb[1].mxu0  ;;  %v236_v26 = vsel %vm235_vm0, %v204_v24, inf }
 0x109   : > { %237 = vmin.xlane.f32.xlu0 %v236_v26  ;;  %v207_v27 = vpop.f32.mrb[2].mxu0 }
 0x10a   : > { %v209_v28 = vpop.f32.mrb[3].mxu0  ;;  %v239_v29 = vsel %vm235_vm0, %v207_v27, inf }
 0x10d   : > { %240 = vmin.xlane.f32.xlu0 %v239_v29 }
 0x10f   : > { %v212_v30 = vpop.f32.mrb[4].mxu0 }
 0x110   : > { %v214_v31 = vpop.f32.mrb[5].mxu0  ;;  %v242_v32 = vsel %vm235_vm0, %v212_v30, inf }
 0x111   : > { %243 = vmin.xlane.f32.xlu1 %v242_v32  ;;  %v215_v33 = vpop.f32.mrb[6].mxu0 }
 0x112   : > { %v217_v34 = vpop.f32.mrb[7].mxu0  ;;  %v245_v35 = vsel %vm235_vm0, %v215_v33, inf }
 0x115   : > { %246 = vmin.xlane.f32.xlu1 %v245_v35 }
 0x117   : > { %v220_v36 = vpop.f32.mrb[8].mxu0 }
 0x118   : > { %v222_v37 = vpop.f32.mrb[9].mxu0  ;;  %v248_v38 = vsel %vm235_vm0, %v220_v36, inf }
 0x119   : > { %249 = vmin.xlane.f32.xlu0 %v248_v38  ;;  %v223_v39 = vpop.f32.mrb[10].mxu0 }
 0x11a   : > { %v225_v40 = vpop.f32.mrb[11].mxu0  ;;  %v251_v41 = vsel %vm235_vm0, %v223_v39, inf }
 0x11b   : > { %252 = vmin.xlane.f32.xlu1 %v251_v41 }
 0x11f   : > { %v228_v42 = vpop.f32.mrb[12].mxu0 }
 0x120   : > { %v230_v43 = vpop.f32.mrb[13].mxu0  ;;  %v254_v44 = vsel %vm235_vm0, %v228_v42, inf }
 0x121   : > { %255 = vmin.xlane.f32.xlu0 %v254_v44  ;;  %v231_v45 = vpop.f32.mrb[14].mxu0 }
 0x122   : > { %v233_v46 = vpop.f32.mrb[15].mxu0  ;;  %v257_v47 = vsel %vm235_vm0, %v231_v45, inf }
 0x123   : > { %258 = vmin.xlane.f32.xlu1 %v257_v47 }
 0x196   : > { %v238_v49 = vpop.xlane.xlu0 %237 }
 0x197   : > { %v260_v50 = vsub.f32 %v238_v49, %v204_v24 }
 0x199   : > { %v268_v51 = vmul.f32 1.442695, %v260_v50  ;;  %v705_v50 = vstv %s397_s16 }
 0x19a   : > { %v241_v52 = vpop.xlane.xlu0 %240 }
 0x19b   : > { %544 = vpow2.f32 %v268_v51  ;;  %v261_v53 = vsub.f32 %v241_v52, %v207_v27 }
 0x19d   : > { %v270_v54 = vmul.f32 1.442695, %v261_v53 }
 0x19e   : > { %v244_v55 = vpop.xlane.xlu1 %243 }
 0x19f   : > { %546 = vpow2.f32 %v270_v54  ;;  %v262_v56 = vsub.f32 %v244_v55, %v212_v30 }
 0x1a1   : > { %v272_v57 = vmul.f32 1.442695, %v262_v56 }
 0x1a2   : > { %v247_v58 = vpop.xlane.xlu1 %246 }
 0x1a3   : > { %548 = vpow2.f32 %v272_v57  ;;  %v263_v59 = vsub.f32 %v247_v58, %v215_v33 }
 0x1a5   : > { %v545_v60 = vpop.eup %544  ;;  %v274_v61 = vmul.f32 1.442695, %v263_v59 }
 0x1a6   : > { %v250_v62 = vpop.xlane.xlu0 %249  ;;  %v284_v63 = vsel %vm235_vm0, %v545_v60, 0.0 }
 0x1a7   : > { %550 = vpow2.f32 %v274_v61  ;;  %v264_v3 = vsub.f32 %v250_v62, %v220_v36  ;;  %285 = vadd.xlane.f32.xlu0 %v284_v63 }
 0x1a8   : > { %v253_v7 = vpop.xlane.xlu1 %252 }
 0x1a9   : > { %v547_v8 = vpop.eup %546  ;;  %v276_v13 = vmul.f32 1.442695, %v264_v3  ;;  %v265_v14 = vsub.f32 %v253_v7, %v223_v39 }
 0x1aa   : > { %v287_v19 = vsel %vm235_vm0, %v547_v8, 0.0  ;;  %v308_v20 = vpack.c.bf16 %v547_v8, %v545_v60 }
 0x1ab   : > { %552 = vpow2.f32 %v276_v13  ;;  %v278_v23 = vmul.f32 1.442695, %v265_v14  ;;  %288 = vadd.xlane.f32.xlu1 %v287_v19 }
 0x1ac   : > { %527 = vmatmul.mubr.msk.bf16.vlgmr.msra.gmra.mrb[0].mxu1 %vm235_vm0, %v308_v20 }
 0x1ad   : > { %v549_v24 = vpop.eup %548  ;;  %554 = vpow2.f32 %v278_v23  ;;  %366 = vmatprep.mubr.bf16.mxu1 %v584_v48 }
 0x1ae   : > { %v256_v25 = vpop.xlane.xlu0 %255  ;;  %v290_v26 = vsel %vm235_vm0, %v549_v24, 0.0 }
 0x1af   : > { %v266_v27 = vsub.f32 %v256_v25, %v228_v42  ;;  %291 = vadd.xlane.f32.xlu0 %v290_v26 }
 0x1b0   : > { %v259_v28 = vpop.xlane.xlu1 %258 }
 0x1b1   : > { %v551_v29 = vpop.eup %550  ;;  %v280_v30 = vmul.f32 1.442695, %v266_v27  ;;  %v267_v31 = vsub.f32 %v259_v28, %v231_v45 }
 0x1b2   : > { %v293_v32 = vsel %vm235_vm0, %v551_v29, 0.0  ;;  %v309_v33 = vpack.c.bf16 %v551_v29, %v549_v24 }
 0x1b3   : > { %556 = vpow2.f32 %v280_v30  ;;  %v282_v34 = vmul.f32 1.442695, %v267_v31  ;;  %294 = vadd.xlane.f32.xlu1 %v293_v32 }
 0x1b4   : > { %528 = vmatmul.mubr.msk.bf16.gmra.mrb[4].mxu1 %vm235_vm0, %v309_v33 }
 0x1b5   : > { %v553_v35 = vpop.eup %552  ;;  %558 = vpow2.f32 %v282_v34  ;;  %376 = vmatprep.mubr.bf16.mxu1 %v584_v48 }
 0x1b6   : > { %v296_v36 = vsel %vm235_vm0, %v553_v35, 0.0 }
 0x1b7   : > { %v555_v37 = vpop.eup %554  ;;  %297 = vadd.xlane.f32.xlu0 %v296_v36 }
 0x1b8   : > { %v299_v38 = vsel %vm235_vm0, %v555_v37, 0.0  ;;  %v310_v39 = vpack.c.bf16 %v555_v37, %v553_v35 }
 0x1b9   : > { %300 = vadd.xlane.f32.xlu1 %v299_v38 }
 0x1bc   : > { %529 = vmatmul.mubr.msk.bf16.gmra.mrb[8].mxu1 %vm235_vm0, %v310_v39 }
 0x1bd   : > { %v557_v40 = vpop.eup %556  ;;  %386 = vmatprep.mubr.bf16.mxu1 %v584_v48 }
 0x1be   : > { %v302_v41 = vsel %vm235_vm0, %v557_v40, 0.0 }
 0x1bf   : > { %v559_v42 = vpop.eup %558  ;;  %303 = vadd.xlane.f32.xlu0 %v302_v41 }
 0x1c0   : > { %v305_v43 = vsel %vm235_vm0, %v559_v42, 0.0  ;;  %v311_v44 = vpack.c.bf16 %v559_v42, %v557_v40 }
 0x1c1   : > { %306 = vadd.xlane.f32.xlu1 %v305_v43 }
 0x1c4   : > { %530 = vmatmul.mubr.msk.bf16.gmra.mrb[12].mxu1 %vm235_vm0, %v311_v44 }
 0x234   : > { %v286_v45 = vpop.xlane.xlu0 %285 }
 0x235   : > { %560 = vrcp.f32 %v286_v45 }
 0x238   : > { %v289_v46 = vpop.xlane.xlu1 %288 }
 0x239   : > { %562 = vrcp.f32 %v289_v46 }
 0x23c   : > { %v292_v47 = vpop.xlane.xlu0 %291 }
 0x23d   : > { %564 = vrcp.f32 %v292_v47 }
 0x23f   : > { %v561_v48 = vpop.eup %560 }
 0x240   : > { %v295_v49 = vpop.xlane.xlu1 %294  ;;  %v407_v53 = vmul.f32 %v561_v48, %v705_v50 }
 0x241   : > { %566 = vrcp.f32 %v295_v49 }
 0x243   : > { %v563_v51 = vpop.eup %562 }
 0x244   : > { %v298_v52 = vpop.xlane.xlu0 %297  ;;  %v408_v58 = vmul.f32 %v563_v51, %v705_v50 }
 0x245   : > { %568 = vrcp.f32 %v298_v52 }
 0x246   : > { %v301_v55 = vpop.xlane.xlu1 %300 }
 0x247   : > { %v565_v3 = vpop.eup %564  ;;  %570 = vrcp.f32 %v301_v55 }
 0x248   : > { %v409_v23 = vmul.f32 %v565_v3, %v705_v50 }
 0x24b   : > { %v567_v14 = vpop.eup %566 }
 0x24c   : > { %v304_v20 = vpop.xlane.xlu0 %303 }
 0x24d   : > { %572 = vrcp.f32 %v304_v20 }
 0x24e   : > { %v307_v24 = vpop.xlane.xlu1 %306 }
 0x24f   : > { %v569_v30 = vpop.eup %568  ;;  %574 = vrcp.f32 %v307_v24 }
 0x250   : > { %v411_v36 = vmul.f32 %v569_v30, %v705_v50 }
 0x251   : > { %v571_v34 = vpop.eup %570 }
 0x27f   : > { %v358_v54 = vpop.f32.mrb[0].mxu1 }
 0x280   : > { %v415_v56 = vmul.f32 %v407_v53, %v358_v54  ;;  %v360_v57 = vpop.f32.mrb[1].mxu1 }
 0x281   : > { %v416_v59 = vmul.f32 %v407_v53, %v360_v57  ;;  %v362_v60 = vpop.f32.mrb[2].mxu1 }
 0x282   : > { %v431_v61 = vadd.f32 %v415_v56, %v628_v2  ;;  %v417_v62 = vmul.f32 %v408_v58, %v362_v60  ;;  %v364_v63 = vpop.f32.mrb[3].mxu1 }
 0x283   : > { %v432_v7 = vadd.f32 %v416_v59, %v622_v0  ;;  %v418_v8 = vmul.f32 %v408_v58, %v364_v63  ;;  %v410_v0 = vmul.f32 %v567_v14, %v705_v50 }
 0x284   : > { %447 = vst [vmem:[%s714_s19] sm:$0xff] %v431_v61  ;;  %v433_v13 = vadd.f32 %v417_v62, %v633_v4 }
 0x285   : > { %448 = vst [vmem:[%s714_s19 + $0x8] sm:$0xff] %v432_v7  ;;  %v434_v19 = vadd.f32 %v418_v8, %v625_v1 }
 0x286   : > { %449 = vst [vmem:[%s714_s19 + $0x10] sm:$0xff] %v433_v13 }
 0x287   : > { %450 = vst [vmem:[%s714_s19 + $0x18] sm:$0xff] %v434_v19  ;;  %v368_v2 = vpop.f32.mrb[4].mxu1 }
 0x288   : > { %v419_v25 = vmul.f32 %v409_v23, %v368_v2  ;;  %v370_v26 = vpop.f32.mrb[5].mxu1 }
 0x289   : > { %v420_v4 = vmul.f32 %v409_v23, %v370_v26  ;;  %v372_v27 = vpop.f32.mrb[6].mxu1 }
 0x28a   : > { %v435_v1 = vadd.f32 %v419_v25, %v646_v9  ;;  %v421_v28 = vmul.f32 %v410_v0, %v372_v27  ;;  %v374_v29 = vpop.f32.mrb[7].mxu1 }
 0x28b   : > { %v436_v31 = vadd.f32 %v420_v4, %v636_v5  ;;  %v422_v32 = vmul.f32 %v410_v0, %v374_v29  ;;  %v412_v5 = vmul.f32 %v571_v34, %v705_v50 }
 0x28c   : > { %451 = vst [vmem:[%s714_s19 + $0x20] sm:$0xff] %v435_v1  ;;  %v437_v33 = vadd.f32 %v421_v28, %v649_v10 }
 0x28d   : > { %452 = vst [vmem:[%s714_s19 + $0x28] sm:$0xff] %v436_v31  ;;  %v438_v35 = vadd.f32 %v422_v32, %v639_v6  ;;  %v573_v6 = vpop.eup %572 }
 0x28e   : > { %453 = vst [vmem:[%s714_s19 + $0x30] sm:$0xff] %v437_v33  ;;  %v575_v46 = vpop.eup %574  ;;  %v413_v49 = vmul.f32 %v573_v6, %v705_v50 }
 0x28f   : > { %454 = vst [vmem:[%s714_s19 + $0x38] sm:$0xff] %v438_v35  ;;  %v378_v9 = vpop.f32.mrb[8].mxu1 }
 0x290   : > { %v423_v37 = vmul.f32 %v411_v36, %v378_v9  ;;  %v380_v38 = vpop.f32.mrb[9].mxu1 }
 0x291   : > { %v424_v39 = vmul.f32 %v411_v36, %v380_v38  ;;  %v382_v40 = vpop.f32.mrb[10].mxu1 }
 0x292   : > { %v439_v10 = vadd.f32 %v423_v37, %v662_v15  ;;  %v425_v41 = vmul.f32 %v412_v5, %v382_v40  ;;  %v384_v42 = vpop.f32.mrb[11].mxu1 }
 0x293   : > { %v440_v43 = vadd.f32 %v424_v39, %v652_v11  ;;  %v426_v44 = vmul.f32 %v412_v5, %v384_v42  ;;  %v414_v11 = vmul.f32 %v575_v46, %v705_v50 }
 0x294   : > { %455 = vst [vmem:[%s714_s19 + $0x40] sm:$0xff] %v439_v10  ;;  %v441_v45 = vadd.f32 %v425_v41, %v665_v16 }
 0x295   : > { %456 = vst [vmem:[%s714_s19 + $0x48] sm:$0xff] %v440_v43  ;;  %v442_v47 = vadd.f32 %v426_v44, %v655_v12 }
 0x296   : > { %457 = vst [vmem:[%s714_s19 + $0x50] sm:$0xff] %v441_v45 }
 0x297   : > { %458 = vst [vmem:[%s714_s19 + $0x58] sm:$0xff] %v442_v47  ;;  %v388_v15 = vpop.f32.mrb[12].mxu1 }
 0x298   : > { %v427_v48 = vmul.f32 %v413_v49, %v388_v15  ;;  %v390_v51 = vpop.f32.mrb[13].mxu1 }
 0x299   : > { %v428_v52 = vmul.f32 %v413_v49, %v390_v51  ;;  %v392_v53 = vpop.f32.mrb[14].mxu1 }
 0x29a   : > { %v443_v16 = vadd.f32 %v427_v48, %v678_v21  ;;  %v429_v54 = vmul.f32 %v414_v11, %v392_v53  ;;  %v394_v55 = vpop.f32.mrb[15].mxu1 }
 0x29b   : > { %v444_v12 = vadd.f32 %v428_v52, %v668_v17  ;;  %v430_v56 = vmul.f32 %v414_v11, %v394_v55 }
 0x29c   : > { %459 = vst [vmem:[%s714_s19 + $0x60] sm:$0xff] %v443_v16  ;;  %v445_v57 = vadd.f32 %v429_v54, %v681_v22 }
 0x29d   : > { %460 = vst [vmem:[%s714_s19 + $0x68] sm:$0xff] %v444_v12  ;;  %v446_v58 = vadd.f32 %v430_v56, %v671_v18 }
 0x29e   : > { %461 = vst [vmem:[%s714_s19 + $0x70] sm:$0xff] %v445_v57 }
 0x29f   : > { %462 = vst [vmem:[%s714_s19 + $0x78] sm:$0xff] %v446_v58 }
 0x2a0 PF: > { %s13_s11 = sadd.s32 1, %s582_s11  }
 0x2a1   : > { %p10_p4 = scmp.ge.s32.totalorder %s13_s11, 4  }
 0x2a3   :  { %12 = sbr.rel (!%p10_p4) target bundleno = 2 (0x2), region = 58 }

</bundles_post_ra>
